<compile_context>
chip_gen: v5e
topology: v5e:2x2
jax: 0.10.0
libtpu: 0.0.40
codegen_flags: <defaults>
</compile_context>

<pallas_src>
import math
import functools

import jax
import jax.numpy as jnp
from jax.experimental import pallas as pl
from jax.experimental.pallas import tpu as pltpu


# ----------------------------------------------------------------------------
# Buffer construction (plain JAX glue — matches nn.Module.__init__)
# ----------------------------------------------------------------------------
def make_pe(d_model: int, max_len: int, dtype=jnp.float32):
    position = jnp.arange(max_len, dtype=jnp.float32)[None, :]                  # (1, max_len)
    div_term = jnp.exp(
        jnp.arange(0, d_model, 2, dtype=jnp.float32) * (-math.log(10000.0) / d_model)
    )[:, None]                                                                  # (d_model//2, 1)
    ang = position * div_term                                                   # (d_model//2, max_len)
    pe = jnp.zeros((1, d_model, max_len), jnp.float32)
    pe = pe.at[0, 0::2, :].set(jnp.sin(ang))
    pe = pe.at[0, 1::2, :].set(jnp.cos(ang))
    return pe.astype(dtype)


# ----------------------------------------------------------------------------
# Kernels
# ----------------------------------------------------------------------------
def _add_pe_kernel(x_ref, pe_ref, o_ref):
    # x_ref / pe_ref / o_ref: (1, Dt, Nt) VMEM tiles.
    o_ref[...] = x_ref[...] + pe_ref[...]


def _add_pe_dropout_kernel(x_ref, pe_ref, bits_ref, o_ref, *, threshold: int, scale: float):
    # Inverted dropout: keep with prob (1 - p), scale kept values by 1/(1 - p).
    y = x_ref[...] + pe_ref[...]
    # uint32 bits -> 23-bit non-negative int; integer compare (no float convert).
    r = (bits_ref[...] >> 9).astype(jnp.int32)            # uniform in [0, 2^23)
    keep = r >= threshold                                  # P(keep) = 1 - p
    o_ref[...] = jnp.where(keep, y * jnp.asarray(scale, y.dtype), jnp.zeros_like(y))


# ----------------------------------------------------------------------------
# Tiling helper: largest tile <= target that is a multiple of `align` and
# divides `dim` exactly; otherwise fall back to the full dim (always legal).
# ----------------------------------------------------------------------------
def _pick_tile(dim: int, target: int, align: int) -> int:
    if dim <= target:
        return dim
    t = (target // align) * align
    while t >= align:
        if dim % t == 0:
            return t
        t -= align
    return dim


# ----------------------------------------------------------------------------
# Wrapper
# ----------------------------------------------------------------------------
def positional_encoding(x, pe, *, p_drop: float = 0.1, training: bool = False, rng_key=None):
    """x: [B, D, N]; pe: [1, D, max_len] with max_len >= N."""
    B, D, N = x.shape
    pe_slice = pe[:, :, :N].astype(x.dtype)   # static slice, cheap glue

    # Lane-dense tiles: ~512 lanes x ~256 sublanes f32 ~= 0.5 MiB per buffer.
    Dt = _pick_tile(D, 256, 8)
    Nt = _pick_tile(N, 512, 128)
    nd, nn = D // Dt, N // Nt
    grid = (nd, nn, B)   # batch innermost -> pe block reused across batch steps

    x_spec = pl.BlockSpec((1, Dt, Nt), lambda d, n, b: (b, d, n))
    pe_spec = pl.BlockSpec((1, Dt, Nt), lambda d, n, b: (0, d, n))
    out_spec = pl.BlockSpec((1, Dt, Nt), lambda d, n, b: (b, d, n))

    itemsize = jnp.dtype(x.dtype).itemsize
    bytes_accessed = 2 * B * D * N * itemsize + D * N * itemsize

    if training and p_drop > 0.0:
        if rng_key is None:
            rng_key = jax.random.PRNGKey(0)
        # Pre-generated random bits, tiled exactly like x (portable: works in
        # interpret mode and on hardware; no in-kernel stateful PRNG needed).
        bits = jax.random.bits(rng_key, (B, D, N), dtype=jnp.uint32)
        threshold = int(round(float(p_drop) * (1 << 23)))
        scale = 1.0 / (1.0 - float(p_drop))
        kernel = functools.partial(_add_pe_dropout_kernel, threshold=threshold, scale=scale)
        in_specs = [x_spec, pe_spec,
                    pl.BlockSpec((1, Dt, Nt), lambda d, n, b: (b, d, n))]
        operands = (x, pe_slice, bits)
        bytes_accessed += B * D * N * 4
    else:
        kernel = _add_pe_kernel
        in_specs = [x_spec, pe_spec]
        operands = (x, pe_slice)

    cost = pl.CostEstimate(flops=B * D * N, transcendentals=0, bytes_accessed=bytes_accessed)

    return pl.pallas_call(
        kernel,
        out_shape=jax.ShapeDtypeStruct((B, D, N), x.dtype),
        grid=grid,
        in_specs=in_specs,
        out_specs=out_spec,
        compiler_params=pltpu.CompilerParams(
            dimension_semantics=("parallel", "parallel", "parallel")),
        cost_estimate=cost,
    )(*operands)


# ----------------------------------------------------------------------------
# Demo / correctness check
# ----------------------------------------------------------------------------
if __name__ == "__main__":
    B, D, N, MAX_LEN = 2, 32, 16, 64
    P_DROP = 0.1

    key = jax.random.PRNGKey(0)
    kx, kdrop = jax.random.split(key)
    x = jax.random.normal(kx, (B, D, N), dtype=jnp.float32)

    pe = make_pe(D, MAX_LEN)

    # Eval-mode forward (dropout is identity in eval, as in nn.Module.eval()).
    out = positional_encoding(x, pe, p_drop=P_DROP, training=False)
    out = jax.block_until_ready(out)

    # Pure-JAX reference of the PyTorch forward (eval mode).
    ref = x + pe[:, :, :N]
    assert out.shape == (B, D, N)
    assert jnp.allclose(out, ref, atol=1e-6, rtol=1e-6)

    # Training (dropout) path: every output element must be 0 or (x+pe)/(1-p).
    out_train = positional_encoding(x, pe, p_drop=P_DROP, training=True, rng_key=kdrop)
    out_train = jax.block_until_ready(out_train)
    expected = ref / (1.0 - P_DROP)
    ok = jnp.isclose(out_train, 0.0, atol=1e-6) | jnp.isclose(out_train, expected, atol=1e-5)
    assert bool(jnp.all(ok))
    # Roughly (1 - p) of elements kept.
    keep_frac = float(jnp.mean((out_train != 0.0).astype(jnp.float32)))
    assert 0.7 < keep_frac <= 1.0

    print("KERNEL_OK")
</pallas_src>

<mosaic_0001>
module attributes {stable_mosaic.version = 11 : i64} {
  func.func @_add_pe_kernel(%arg0: i32, %arg1: i32, %arg2: i32, %arg3: memref<1x32x16xf32, #tpu.memory_space<vmem>>, %arg4: memref<1x32x16xf32, #tpu.memory_space<vmem>>, %arg5: memref<1x32x16xf32, #tpu.memory_space<vmem>>) attributes {dimension_semantics = [#tpu.dimension_semantics<parallel>, #tpu.dimension_semantics<parallel>, #tpu.dimension_semantics<parallel>], iteration_bounds = array<i64: 1, 1, 2>, scalar_prefetch = 0 : i64, scratch_operands = 0 : i64, tpu.core_type = #tpu.core_type<tc>, window_params = [{transform_indices = @transform_0, window_bounds = array<i64: 1, 32, 16>}, {transform_indices = @transform_1, window_bounds = array<i64: 1, 32, 16>}, {transform_indices = @transform_2, window_bounds = array<i64: 1, 32, 16>}]} {
    %c0 = arith.constant 0 : index
    %c0_0 = arith.constant 0 : index
    %c0_1 = arith.constant 0 : index
    %0 = vector.load %arg3[%c0, %c0_0, %c0_1] : memref<1x32x16xf32, #tpu.memory_space<vmem>>, vector<1x32x16xf32>
    %c0_2 = arith.constant 0 : index
    %c0_3 = arith.constant 0 : index
    %c0_4 = arith.constant 0 : index
    %1 = vector.load %arg4[%c0_2, %c0_3, %c0_4] : memref<1x32x16xf32, #tpu.memory_space<vmem>>, vector<1x32x16xf32>
    %2 = arith.addf %0, %1 : vector<1x32x16xf32>
    %c0_5 = arith.constant 0 : index
    %c0_6 = arith.constant 0 : index
    %c0_7 = arith.constant 0 : index
    %3 = vector.load %arg5[%c0_5, %c0_6, %c0_7] : memref<1x32x16xf32, #tpu.memory_space<vmem>>, vector<1x32x16xf32>
    tpu.vector_store %arg5[%c0_5, %c0_6, %c0_7], %2 {strides = array<i32>} : memref<1x32x16xf32, #tpu.memory_space<vmem>>, vector<1x32x16xf32>,
    return
  }
  func.func @transform_0(%arg0: i32, %arg1: i32, %arg2: i32) -> (i32, i32, i32) {
    %c0_i32 = arith.constant 0 : i32
    return %arg2, %arg0, %arg1 : i32, i32, i32
  }
  func.func @transform_1(%arg0: i32, %arg1: i32, %arg2: i32) -> (i32, i32, i32) {
    %c0_i32 = arith.constant 0 : i32
    %c0_i32_0 = arith.constant 0 : i32
    return %c0_i32, %arg0, %arg1 : i32, i32, i32
  }
  func.func @transform_2(%arg0: i32, %arg1: i32, %arg2: i32) -> (i32, i32, i32) {
    %c0_i32 = arith.constant 0 : i32
    return %arg2, %arg0, %arg1 : i32, i32, i32
  }
}

</mosaic_0001>

<bundles_post_ra>
// kernel: tpu_custom_call.1
= control target key start
LH: loop header
LB: loop body
LE: loop exit
PB: predicated region body
PF: predicated region fallthrough
CT: control target
= control target key end

     0   :  { %s457_s9 = smov 0   ;;  %s459_s10 = smov 0   ;;  %s499_s0 = inlined_call_operand.vmem [shape: f32[2,32,16], index: 0, kind: input, shape index: {}]   ;;  %s500_s1 = inlined_call_operand.vmem [shape: f32[1,32,16], index: 1, kind: input, shape index: {}]   ;;  %s501_s2 = inlined_call_operand.vmem [shape: f32[2,32,16], index: 2, kind: output, shape index: {}]  }
   0x1   :  { %s461_s11 = smov 0  }
   0x2 LB: > { %s24_s12 = sadd.s32 1, %s436_s10  ;;  %p385_p0 = scmp.ge.s32.totalorder %s440_s11, 1  ;;  %s440_s11 = sphi %s461_s11, %s12_s11   ;;  %s436_s10 = sphi %s459_s10, %s503_s10   ;;  %s432_s9 = sphi %s457_s9, %s502_s9  }
   0x3   : > { %p25_p1 = scmp.ge.s32.totalorder %s24_s12, 2  ;;  %p163_p2 = scmp.lt.s32.totalorder %s440_s11, 3 }
   0x5   : > { %s505_s12 = smov (%p25_p1, %s24_s12), 0  ;;  %p164_p3 = pnand %p385_p0, %p163_p2 }
   0x6   : > { %p208_p4 = scmp.lt.s32.totalorder (!%p164_p3), %s432_s9, 1 }
   0x7   : > { %167 = sbr.rel (%p164_p3) target bundleno = 22 (0x16), region = 28 }
   0xc   : > { %s507_s9 = smov (!%p208_p4, %s432_s9), 1  ;;  %v246_v0 = vld [vmem:[%s500_s1] sm:$0xff]  ;;  %v247_v1 = vld [vmem:[%s500_s1 + $0x8] sm:$0xff]  ;;  %v248_v2 = vld [vmem:[%s500_s1 + $0x10] sm:$0xff]  ;;  %vm254_vm0 = vcmask 130048  }
   0xd   : > { %s392_s13 = sshll.u32 %s507_s9, 5  ;;  %v249_v3 = vld [vmem:[%s500_s1 + $0x18] sm:$0xff] }
   0xe   : > { %s218_s22 = scalar_lea.vmem %s499_s0, %s392_s13  ;;  %s240_s27 = scalar_lea.vmem %s501_s2, %s392_s13 }
   0xf   : > { %v242_v4 = vld [vmem:[%s218_s22] sm:$0xff]  ;;  %v243_v5 = vld [vmem:[%s218_s22 + $0x8] sm:$0xff]  ;;  %v244_v6 = vld [vmem:[%s218_s22 + $0x10] sm:$0xff] }
  0x10   : > { %v250_v7 = vadd.f32 %v246_v0, %v242_v4  ;;  %v251_v8 = vadd.f32 %v247_v1, %v243_v5  ;;  %v252_v9 = vadd.f32 %v248_v2, %v244_v6  ;;  %v245_v10 = vld [vmem:[%s218_s22 + $0x18] sm:$0xff] }
  0x11   : > { %v253_v11 = vadd.f32 %v249_v3, %v245_v10 }
  0x12   : > { %255 = vst.msk [vmem:[%s240_s27] sm:$0xff] %vm254_vm0, %v250_v7 }
  0x13   : > { %256 = vst.msk [vmem:[%s240_s27 + $0x8] sm:$0xff] %vm254_vm0, %v251_v8 }
  0x14   : > { %257 = vst.msk [vmem:[%s240_s27 + $0x10] sm:$0xff] %vm254_vm0, %v252_v9 }
  0x15   : > { %258 = vst.msk [vmem:[%s240_s27 + $0x18] sm:$0xff] %vm254_vm0, %v253_v11 }
  0x16 PF: > { %s12_s11 = sadd.s32 1, %s440_s11   ;;  %s502_s9 = smov %s436_s10 }
  0x17   : > { %p9_p5 = scmp.ge.s32.totalorder %s12_s11, 4   ;;  %s503_s10 = smov %s505_s12 }
  0x19   :  { %11 = sbr.rel (!%p9_p5) target bundleno = 2 (0x2), region = 61 }

</bundles_post_ra>
